<compile_context>
chip_gen: v7x
topology: tpu7x:2x2x1
jax: 0.10.0
libtpu: 0.0.40
codegen_flags: <defaults>
</compile_context>

<pallas_src>
import functools

import numpy as np
import jax
import jax.numpy as jnp
from jax.experimental import pallas as pl
from jax.experimental.pallas import tpu as pltpu

NUM_BOXES = 2
NUM_CLASSES = 20
IMAGE_SIZE = 448
GRID_SIZE = 64
VMEM_LIMIT = 32 * 1024 * 1024  # <= 32 MiB: safe on v7x (64 MiB) and v5e/v6e

# (cin, cout) of Conv1..Conv9
CONV_CFG = [(3, 16), (16, 32), (32, 64), (64, 128), (128, 256), (256, 512),
            (512, 1024), (1024, 1024), (1024, 1024)]


def _round_up(x, m):
    return (x + m - 1) // m * m


def _cparams(sem):
    return pltpu.CompilerParams(dimension_semantics=sem,
                                vmem_limit_bytes=VMEM_LIMIT)


# --------------------------------------------------------------------------
# conv1-4: fused 3x3 conv + bias + ReLU + 2x2 maxpool on a space-to-depth slab
# --------------------------------------------------------------------------
# The wrapper reorganises the (B, C, H, W) activation into a zero-bordered,
# flattened space-to-depth slab
#   S[b, (2*ph+pw)*C + c, hp*Wp + wp] = x[b, c, 2*(hp-1)+ph, 2*(wp-1)+pw]
# (1x the activation bytes - the 9x im2col never hits HBM).  In the kernel each
# (pool-quadrant, pooled-pixel-shift) pair is a *static* lane-offset slice of
# the slab; the 3x3 taps are pre-scattered into 16 small (Cout, 4C) weight
# matrices at init, so each quadrant is 4 MXU dots summed, then max-reduced
# across quadrants, biased, ReLU'd and stored lane-dense in bf16.

def _s2d_conv_pool_kernel(s_ref, w_ref, b_ref, o_ref, *, wp, l_out, lc):
    # s_ref: (1, C4, Lpad) bf16 ; w_ref: (16, Cout, C4) bf16
    # b_ref: (Cout, 1) f32      ; o_ref: (1, Cout, L_out) bf16
    bias = b_ref[...]
    for c0 in range(0, l_out, lc):            # static in-kernel lane chunking
        cl = min(lc, l_out - c0)
        mx = None
        for qh in range(2):
            for qw in range(2):
                acc = None
                for si in range(4):
                    dh = qh - 1 + si // 2      # pooled-row shift of this dot
                    dw = qw - 1 + si % 2       # pooled-col shift of this dot
                    off = (1 + dh) * wp + (1 + dw) + c0
                    rhs = s_ref[0, :, pl.ds(off, cl)]        # (C4, cl) bf16
                    y = jnp.dot(w_ref[(2 * qh + qw) * 4 + si], rhs,
                                preferred_element_type=jnp.float32)
                    acc = y if acc is None else acc + y
                mx = acc if mx is None else jnp.maximum(mx, acc)
        o_ref[0, :, pl.ds(c0, cl)] = jnp.maximum(mx + bias, 0.0).astype(o_ref.dtype)


def s2d_conv_relu_pool(x, wq, bias):
    """x: (B, C, H, W); wq: (16, Cout, C4) scattered bf16 weights; bias: (Cout,).

    Returns conv3x3(pad=1) + bias + ReLU + maxpool2x2 as (B, Cout, H//2, W//2) bf16.
    """
    B, C, H, W = x.shape
    cout, c4 = wq.shape[1], wq.shape[2]
    ho, wo = H // 2, W // 2
    hp, wp = ho + 2, wo + 2
    l_out = _round_up(ho * wp, 128)            # lane-dense output slab
    lpad = _round_up(2 * wp + 2 + l_out, 128)

    # space-to-depth (plane index (ph*2+pw) major, channel minor), zero halo,
    # flatten, pad to a lane-aligned length.  ~1x activation bytes of XLA glue.
    s = x.astype(jnp.bfloat16).reshape(B, C, ho, 2, wo, 2)
    s = jnp.transpose(s, (0, 3, 5, 1, 2, 4)).reshape(B, 4 * C, ho, wo)
    s = jnp.pad(s, ((0, 0), (0, c4 - 4 * C), (1, 1), (1, 1)))
    s = s.reshape(B, c4, hp * wp)
    s = jnp.pad(s, ((0, 0), (0, 0), (0, lpad - hp * wp)))

    kern = functools.partial(_s2d_conv_pool_kernel, wp=wp, l_out=l_out, lc=8192)
    out = pl.pallas_call(
        kern,
        out_shape=jax.ShapeDtypeStruct((B, cout, l_out), jnp.bfloat16),
        grid=(B,),
        in_specs=[pl.BlockSpec((1, c4, lpad), lambda b: (b, 0, 0)),
                  pl.BlockSpec((16, cout, c4), lambda b: (0, 0, 0)),
                  pl.BlockSpec((cout, 1), lambda b: (0, 0))],
        out_specs=pl.BlockSpec((1, cout, l_out), lambda b: (b, 0, 0)),
        compiler_params=_cparams(("parallel",)),
    )(s, wq, bias.reshape(cout, 1))
    # drop the flat tail + the 2 junk columns per pooled row
    return out[:, :, :ho * wp].reshape(B, cout, ho, wp)[:, :, :, :wo]


def _scatter_pool_weights(w):
    """(3, 3, Cin, Cout) conv weight -> (16, Cout, C4) scattered weights.

    Entry [4*(2*qh+qw)+si, co, (2*ph+pw)*C+c] = w[dy, dx, c, co] for the tap
    that pool-quadrant (qh, qw) reads from parity plane (ph, pw) at pooled
    shift (qh-1+si//2, qw-1+si%2).  C4 = 4*Cin rounded up to 16 (zero padded).
    """
    c, cout = w.shape[2], w.shape[3]
    c4 = _round_up(4 * c, 16)
    wq = np.zeros((4, 4, cout, c4), np.float32)
    for qh in range(2):
        for qw in range(2):
            for si in range(4):
                dh = qh - 1 + si // 2
                dw = qw - 1 + si % 2
                for ph in range(2):
                    for pw in range(2):
                        dy = 2 * dh + ph + 1 - qh
                        dx = 2 * dw + pw + 1 - qw
                        if 0 <= dy <= 2 and 0 <= dx <= 2:
                            p = 2 * ph + pw
                            wq[2 * qh + qw, si, :, p * c:(p + 1) * c] = w[dy, dx].T
    return wq.reshape(16, cout, c4)


# --------------------------------------------------------------------------
# conv5-6: quadrant-im2col matmul (NHWC, channels on lanes), Cout grid-split
# --------------------------------------------------------------------------
def _conv_pool_kernel_pc(x_ref, w_ref, b_ref, o_ref):
    # x: (B, 4, P, K) bf16; w: (K, tn) bf16; b: (1, tn) f32; o: (B, P, tn) bf16
    nb = x_ref.shape[0]
    for bi in range(nb):
        acc = None
        for q in range(4):
            y = jnp.dot(x_ref[bi, q], w_ref[...],
                        preferred_element_type=jnp.float32)
            acc = y if acc is None else jnp.maximum(acc, y)
        o_ref[bi] = jnp.maximum(acc + b_ref[...], 0.0).astype(o_ref.dtype)


def conv_relu_pool_pc(x4, w, b, *, tn):
    """x4: (B, 4, P, K) bf16 quadrant-im2col; w: (K, N) bf16 -> (B, P, N) bf16."""
    B, _, P, K = x4.shape
    N = w.shape[1]
    return pl.pallas_call(
        _conv_pool_kernel_pc,
        out_shape=jax.ShapeDtypeStruct((B, P, N), jnp.bfloat16),
        grid=(N // tn,),
        in_specs=[pl.BlockSpec((B, 4, P, K), lambda n: (0, 0, 0, 0)),
                  pl.BlockSpec((K, tn), lambda n: (0, n)),
                  pl.BlockSpec((1, tn), lambda n: (0, n))],
        out_specs=pl.BlockSpec((B, P, tn), lambda n: (0, 0, n)),
        compiler_params=_cparams(("parallel",)),
    )(x4, w, b.reshape(1, N))


# --------------------------------------------------------------------------
# conv7-9: full-K matmul + bias + ReLU, N split for megacore, bf16 out
# --------------------------------------------------------------------------
def _matmul_bias_act_kernel(x_ref, w_ref, b_ref, o_ref, *, activation):
    y = jnp.dot(x_ref[...], w_ref[...],
                preferred_element_type=jnp.float32) + b_ref[...]
    if activation == "relu":
        y = jnp.maximum(y, 0.0)
    o_ref[...] = y.astype(o_ref.dtype)


def matmul_bias_act(x, w, b, *, tn, activation=None):
    """x: (M, K) bf16; w: (K, N) bf16; b: (N,) f32 -> (M, N) bf16."""
    M, K = x.shape
    N = w.shape[1]
    return pl.pallas_call(
        functools.partial(_matmul_bias_act_kernel, activation=activation),
        out_shape=jax.ShapeDtypeStruct((M, N), jnp.bfloat16),
        grid=(N // tn,),
        in_specs=[pl.BlockSpec((M, K), lambda n: (0, 0)),
                  pl.BlockSpec((K, tn), lambda n: (0, n)),
                  pl.BlockSpec((1, tn), lambda n: (0, n))],
        out_specs=pl.BlockSpec((M, tn), lambda n: (0, n)),
        compiler_params=_cparams(("parallel",)),
    )(x, w, b.reshape(1, N))


# --------------------------------------------------------------------------
# FC1 -> FC2 -> FC3 + sigmoid + box transform, one fused kernel
# --------------------------------------------------------------------------
def _fc_stack_kernel(x_ref, w1_ref, b1_ref, w2_ref, b2_ref, w3_ref, b3_ref,
                     scale_ref, add_ref, out_ref, pred_ref, acc_ref, *, nk):
    k = pl.program_id(0)

    @pl.when(k == 0)
    def _init():
        acc_ref[...] = jnp.zeros_like(acc_ref)

    acc_ref[...] += jnp.dot(x_ref[...], w1_ref[...],
                            preferred_element_type=jnp.float32)

    @pl.when(k == nk - 1)
    def _finalize():
        h1 = (acc_ref[...] + b1_ref[...]).astype(jnp.bfloat16)
        h2 = (jnp.dot(h1, w2_ref[...], preferred_element_type=jnp.float32)
              + b2_ref[...]).astype(jnp.bfloat16)
        y = (jnp.dot(h2, w3_ref[...], preferred_element_type=jnp.float32)
             + b3_ref[...])
        sig = jnp.where(y >= 0.0,
                        1.0 / (1.0 + jnp.exp(-y)),
                        jnp.exp(y) / (1.0 + jnp.exp(y)))
        out_ref[...] = sig
        pred_ref[...] = add_ref[...] + sig * scale_ref[...]


def fc_stack(x, w1, b1, w2, b2, w3, b3, scale, add, *, tk):
    B, K = x.shape
    N1 = w1.shape[1]
    N3 = w3.shape[1]
    nk = K // tk
    kern = functools.partial(_fc_stack_kernel, nk=nk)
    return pl.pallas_call(
        kern,
        out_shape=(jax.ShapeDtypeStruct((B, N3), jnp.float32),
                   jax.ShapeDtypeStruct((B, N3), jnp.float32)),
        grid=(nk,),
        in_specs=[pl.BlockSpec((B, tk), lambda k: (0, k)),
                  pl.BlockSpec((tk, N1), lambda k: (k, 0)),
                  pl.BlockSpec((1, N1), lambda k: (0, 0)),
                  pl.BlockSpec((N1, N1), lambda k: (0, 0)),
                  pl.BlockSpec((1, N1), lambda k: (0, 0)),
                  pl.BlockSpec((N1, N3), lambda k: (0, 0)),
                  pl.BlockSpec((1, N3), lambda k: (0, 0)),
                  pl.BlockSpec((1, N3), lambda k: (0, 0)),
                  pl.BlockSpec((1, N3), lambda k: (0, 0))],
        out_specs=(pl.BlockSpec((B, N3), lambda k: (0, 0)),
                   pl.BlockSpec((B, N3), lambda k: (0, 0))),
        scratch_shapes=[pltpu.VMEM((B, N1), jnp.float32)],
        compiler_params=_cparams(("arbitrary",)),
    )(x, w1, b1.reshape(1, N1), w2, b2.reshape(1, N1),
      w3, b3.reshape(1, N3), scale.reshape(1, N3), add.reshape(1, N3))


# --------------------------------------------------------------------------
# im2col glue for conv5-9 (small tensors; XLA-side, bf16)
# --------------------------------------------------------------------------
def _quadrant_im2col_nhwc(x, dtype):
    """(B, H, W, C) -> (B, 4, Ho*Wo, 9C); axis 1 = the 4 pool-window members."""
    B, H, W, C = x.shape
    xp = jnp.pad(x.astype(dtype), ((0, 0), (1, 1), (1, 1), (0, 0)))
    Ho, Wo = H // 2, W // 2
    quads = []
    for qh in range(2):
        for qw in range(2):
            taps = [xp[:, qh + dy:qh + dy + H:2, qw + dx:qw + dx + W:2, :]
                    for dy in range(3) for dx in range(3)]
            quads.append(jnp.concatenate(taps, axis=-1))      # (B, Ho, Wo, 9C)
    q = jnp.stack(quads, axis=1)                              # (B, 4, Ho, Wo, 9C)
    return q.reshape(B, 4, Ho * Wo, 9 * C)


def _im2col_nhwc(x, dtype):
    """(B, H, W, C) -> (B*H*W, 9C) for stride-1 pad-1 3x3 conv (no pooling)."""
    B, H, W, C = x.shape
    xp = jnp.pad(x.astype(dtype), ((0, 0), (1, 1), (1, 1), (0, 0)))
    taps = [xp[:, dy:dy + H, dx:dx + W, :] for dy in range(3) for dx in range(3)]
    return jnp.concatenate(taps, axis=-1).reshape(B * H * W, 9 * C)


# --------------------------------------------------------------------------
# Parameters / constants
# --------------------------------------------------------------------------
def init_params(key):
    params = {}
    for idx, (cin, cout) in enumerate(CONV_CFG):
        key, kw, kb = jax.random.split(key, 3)
        n = 3 * 3 * cout                          # torch init: N(0, sqrt(2/n))
        w = jax.random.normal(kw, (3, 3, cin, cout), jnp.float32) * np.sqrt(2.0 / n)
        bound = 1.0 / np.sqrt(cin * 9)
        bias = jax.random.uniform(kb, (cout,), jnp.float32, -bound, bound)
        layer = idx + 1
        if layer <= 4:
            # pre-scattered weights for the fused space-to-depth conv+pool kernel
            wq = _scatter_pool_weights(np.asarray(w))
            params[f"conv{layer}"] = (jnp.asarray(wq, jnp.bfloat16), bias)
        else:
            # (K=9*Cin, N=Cout) matmul weights, stored bf16
            params[f"conv{layer}"] = (w.reshape(9 * cin, cout).astype(jnp.bfloat16),
                                      bias)

    out_dim = 7 * 7 * (5 * NUM_BOXES + NUM_CLASSES)
    fc_cfg = [(7 * 7 * 1024, 256), (256, 256), (256, out_dim)]
    for idx, (fin, fout) in enumerate(fc_cfg):
        key, kw, kb = jax.random.split(key, 3)
        bound = 1.0 / np.sqrt(fin)
        w = jax.random.uniform(kw, (fin, fout), jnp.float32, -bound, bound)
        bias = jax.random.uniform(kb, (fout,), jnp.float32, -bound, bound)
        if idx == 0:
            # fold the PyTorch NCHW flatten permutation into FC1's rows so the
            # forward pass can flatten the NHWC conv9 activations directly
            w = jnp.transpose(w.reshape(1024, 7, 7, fout), (1, 2, 0, 3)).reshape(fin, fout)
        params[f"fc{idx + 1}"] = (w.astype(jnp.bfloat16), bias)
    return params


def make_transform_consts():
    D = 5 * NUM_BOXES + NUM_CLASSES
    xs = np.linspace(0.0, 384.0, 7, dtype=np.float32)
    cx = np.broadcast_to(xs[None, :], (7, 7))   # meshgrid 'xy': corner_x[i,j]=xs[j]
    cy = np.broadcast_to(xs[:, None], (7, 7))   #                corner_y[i,j]=xs[i]
    scale = np.ones((D, 7, 7), np.float32)
    add = np.zeros((D, 7, 7), np.float32)
    for k in range(NUM_BOXES):
        scale[5 * k] = GRID_SIZE
        add[5 * k] = cx
        scale[5 * k + 1] = GRID_SIZE
        add[5 * k + 1] = cy
        scale[5 * k + 2] = IMAGE_SIZE
        scale[5 * k + 3] = IMAGE_SIZE
    return jnp.asarray(scale.reshape(-1)), jnp.asarray(add.reshape(-1))


# --------------------------------------------------------------------------
# Full forward
# --------------------------------------------------------------------------
@jax.jit
def yolo_forward(params, x_nchw):
    B = x_nchw.shape[0]

    # conv1-4: fused space-to-depth conv + bias + ReLU + maxpool kernels
    h = x_nchw
    for i in (1, 2, 3, 4):
        wq, bias = params[f"conv{i}"]
        h = s2d_conv_relu_pool(h, wq, bias)        # (B, Cout, H/2, W/2) bf16

    # conv5-6: quadrant-im2col matmul kernels (NHWC, channels on lanes)
    h_nhwc = jnp.transpose(h, (0, 2, 3, 1))        # (B, 28, 28, 128)
    for i in (5, 6):
        w, bias = params[f"conv{i}"]
        cout = w.shape[1]
        xq = _quadrant_im2col_nhwc(h_nhwc, jnp.bfloat16)
        out = conv_relu_pool_pc(xq, w, bias, tn=cout // 2)
        Hn = h_nhwc.shape[1] // 2
        h_nhwc = out.reshape(B, Hn, Hn, cout)

    # conv7-9: im2col matmul + bias + ReLU, full-K, N split for megacore
    for i in (7, 8, 9):
        w, bias = params[f"conv{i}"]
        cout = w.shape[1]
        xc = _im2col_nhwc(h_nhwc, jnp.bfloat16)    # (B*49, 9*Cin)
        out = matmul_bias_act(xc, w, bias, tn=512, activation="relu")
        h_nhwc = out.reshape(B, 7, 7, cout)

    # FC1 -> FC2 -> FC3 + sigmoid + box transform, one fused kernel.
    # (NHWC flatten; FC1 rows were permuted at init to match NCHW semantics.)
    feat = h_nhwc.reshape(B, 7 * 7 * 1024)
    w1, b1 = params["fc1"]
    w2, b2 = params["fc2"]
    w3, b3 = params["fc3"]
    scale, add = make_transform_consts()
    output_flat, pred_flat = fc_stack(feat, w1, b1, w2, b2, w3, b3, scale, add,
                                      tk=12544)

    D = 5 * NUM_BOXES + NUM_CLASSES
    output = output_flat.reshape(B, D, 7, 7)
    pred_box = pred_flat.reshape(B, D, 7, 7)
    return output, pred_box


def _reference_conv_relu_pool(x, w, bias):
    """Pure-JAX reference for the fused conv+ReLU+pool (self-check only)."""
    y = jax.lax.conv_general_dilated(
        x, jnp.transpose(w, (3, 2, 0, 1)), window_strides=(1, 1),
        padding=((1, 1), (1, 1)), dimension_numbers=("NCHW", "OIHW", "NCHW"))
    y = jnp.maximum(y + bias[None, :, None, None], 0.0)
    return jax.lax.reduce_window(y, -jnp.inf, jax.lax.max,
                                 (1, 1, 2, 2), (1, 1, 2, 2), "VALID")


if __name__ == "__main__":
    root = jax.random.PRNGKey(0)
    kp, kx, kxt, kwt, kbt = jax.random.split(root, 5)
    params = init_params(kp)

    # Quick self-check of the fused space-to-depth conv+pool kernel (tiny case).
    xt = jax.random.normal(kxt, (1, 3, 16, 16), jnp.float32)
    wt = jax.random.normal(kwt, (3, 3, 3, 16), jnp.float32) * 0.1
    bt = jax.random.normal(kbt, (16,), jnp.float32) * 0.1
    wqt = jnp.asarray(_scatter_pool_weights(np.asarray(wt)), jnp.bfloat16)
    got = s2d_conv_relu_pool(xt, wqt, bt).astype(jnp.float32)
    want = _reference_conv_relu_pool(xt, wt, bt)
    err = float(jnp.max(jnp.abs(got - want)))
    tol = 0.05 + 0.05 * float(jnp.max(jnp.abs(want)))
    assert err < tol, f"s2d conv+pool self-check failed: max err {err} > {tol}"

    # batch=2; channels/spatial are dictated by the architecture (3 x 448 x 448)
    x = jax.random.normal(kx, (2, 3, IMAGE_SIZE, IMAGE_SIZE), jnp.float32)

    output, pred_box = yolo_forward(params, x)
    jax.block_until_ready((output, pred_box))

    D = 5 * NUM_BOXES + NUM_CLASSES
    assert output.shape == (2, D, 7, 7), output.shape
    assert pred_box.shape == (2, D, 7, 7), pred_box.shape
    assert output.dtype == jnp.float32 and pred_box.dtype == jnp.float32
    assert bool(jnp.all(output >= 0.0) & jnp.all(output <= 1.0))
    assert bool(jnp.all(jnp.isfinite(pred_box)))
    print("KERNEL_OK")
</pallas_src>

<mosaic_0001>
module attributes {stable_mosaic.version = 11 : i64} {
  func.func @_s2d_conv_pool_kernel(%arg0: i32, %arg1: memref<1x16x256xbf16, #tpu.memory_space<vmem>>, %arg2: memref<16x16x16xbf16, #tpu.memory_space<vmem>>, %arg3: memref<16x1xf32, #tpu.memory_space<vmem>>, %arg4: memref<1x16x128xbf16, #tpu.memory_space<vmem>>) attributes {dimension_semantics = [#tpu.dimension_semantics<parallel>], iteration_bounds = array<i64: 1>, scalar_prefetch = 0 : i64, scratch_operands = 0 : i64, tpu.core_type = #tpu.core_type<tc>, window_params = [{transform_indices = @transform_0, window_bounds = array<i64: 1, 16, 256>}, {pipeline_mode = #tpu.pipeline_mode<synchronous>, transform_indices = @transform_1, window_bounds = array<i64: 16, 16, 16>}, {pipeline_mode = #tpu.pipeline_mode<synchronous>, transform_indices = @transform_2, window_bounds = array<i64: 16, 1>}, {transform_indices = @transform_3, window_bounds = array<i64: 1, 16, 128>}]} {
    %c0 = arith.constant 0 : index
    %c0_0 = arith.constant 0 : index
    %0 = vector.load %arg3[%c0, %c0_0] : memref<16x1xf32, #tpu.memory_space<vmem>>, vector<16x1xf32>
    %c0_1 = arith.constant 0 : index
    %c0_2 = arith.constant 0 : index
    %c0_3 = arith.constant 0 : index
    %1 = vector.load %arg1[%c0_1, %c0_2, %c0_3] : memref<1x16x256xbf16, #tpu.memory_space<vmem>>, vector<1x16x128xbf16>
    %2 = vector.shape_cast %1 : vector<1x16x128xbf16> to vector<16x128xbf16>
    %c0_4 = arith.constant 0 : index
    %c0_5 = arith.constant 0 : index
    %c0_6 = arith.constant 0 : index
    %3 = vector.load %arg2[%c0_4, %c0_5, %c0_6] : memref<16x16x16xbf16, #tpu.memory_space<vmem>>, vector<1x16x16xbf16>
    %4 = vector.shape_cast %3 : vector<1x16x16xbf16> to vector<16x16xbf16>
    %cst = arith.constant dense<0.000000e+00> : vector<16x128xf32>
    %5 = tpu.matmul %4, %2, %cst {dimension_numbers = #tpu.dot_dimension_numbers<[1], [0], [0], [1], [0, 0, 1, 1], [], []>} : vector<16x16xbf16>, vector<16x128xbf16>, vector<16x128xf32> -> vector<16x128xf32>
    %c0_7 = arith.constant 0 : index
    %c0_8 = arith.constant 0 : index
    %c1 = arith.constant 1 : index
    %6 = vector.load %arg1[%c0_7, %c0_8, %c1] : memref<1x16x256xbf16, #tpu.memory_space<vmem>>, vector<1x16x128xbf16>
    %7 = vector.shape_cast %6 : vector<1x16x128xbf16> to vector<16x128xbf16>
    %c1_9 = arith.constant 1 : index
    %c0_10 = arith.constant 0 : index
    %c0_11 = arith.constant 0 : index
    %8 = vector.load %arg2[%c1_9, %c0_10, %c0_11] : memref<16x16x16xbf16, #tpu.memory_space<vmem>>, vector<1x16x16xbf16>
    %9 = vector.shape_cast %8 : vector<1x16x16xbf16> to vector<16x16xbf16>
    %cst_12 = arith.constant dense<0.000000e+00> : vector<16x128xf32>
    %10 = tpu.matmul %9, %7, %cst_12 {dimension_numbers = #tpu.dot_dimension_numbers<[1], [0], [0], [1], [0, 0, 1, 1], [], []>} : vector<16x16xbf16>, vector<16x128xbf16>, vector<16x128xf32> -> vector<16x128xf32>
    %11 = arith.addf %5, %10 : vector<16x128xf32>
    %c0_13 = arith.constant 0 : index
    %c0_14 = arith.constant 0 : index
    %c10 = arith.constant 10 : index
    %12 = vector.load %arg1[%c0_13, %c0_14, %c10] : memref<1x16x256xbf16, #tpu.memory_space<vmem>>, vector<1x16x128xbf16>
    %13 = vector.shape_cast %12 : vector<1x16x128xbf16> to vector<16x128xbf16>
    %c2 = arith.constant 2 : index
    %c0_15 = arith.constant 0 : index
    %c0_16 = arith.constant 0 : index
    %14 = vector.load %arg2[%c2, %c0_15, %c0_16] : memref<16x16x16xbf16, #tpu.memory_space<vmem>>, vector<1x16x16xbf16>
    %15 = vector.shape_cast %14 : vector<1x16x16xbf16> to vector<16x16xbf16>
    %cst_17 = arith.constant dense<0.000000e+00> : vector<16x128xf32>
    %16 = tpu.matmul %15, %13, %cst_17 {dimension_numbers = #tpu.dot_dimension_numbers<[1], [0], [0], [1], [0, 0, 1, 1], [], []>} : vector<16x16xbf16>, vector<16x128xbf16>, vector<16x128xf32> -> vector<16x128xf32>
    %17 = arith.addf %11, %16 : vector<16x128xf32>
    %c0_18 = arith.constant 0 : index
    %c0_19 = arith.constant 0 : index
    %c11 = arith.constant 11 : index
    %18 = vector.load %arg1[%c0_18, %c0_19, %c11] : memref<1x16x256xbf16, #tpu.memory_space<vmem>>, vector<1x16x128xbf16>
    %19 = vector.shape_cast %18 : vector<1x16x128xbf16> to vector<16x128xbf16>
    %c3 = arith.constant 3 : index
    %c0_20 = arith.constant 0 : index
    %c0_21 = arith.constant 0 : index
    %20 = vector.load %arg2[%c3, %c0_20, %c0_21] : memref<16x16x16xbf16, #tpu.memory_space<vmem>>, vector<1x16x16xbf16>
    %21 = vector.shape_cast %20 : vector<1x16x16xbf16> to vector<16x16xbf16>
    %cst_22 = arith.constant dense<0.000000e+00> : vector<16x128xf32>
    %22 = tpu.matmul %21, %19, %cst_22 {dimension_numbers = #tpu.dot_dimension_numbers<[1], [0], [0], [1], [0, 0, 1, 1], [], []>} : vector<16x16xbf16>, vector<16x128xbf16>, vector<16x128xf32> -> vector<16x128xf32>
    %23 = arith.addf %17, %22 : vector<16x128xf32>
    %c0_23 = arith.constant 0 : index
    %c0_24 = arith.constant 0 : index
    %c1_25 = arith.constant 1 : index
    %24 = vector.load %arg1[%c0_23, %c0_24, %c1_25] : memref<1x16x256xbf16, #tpu.memory_space<vmem>>, vector<1x16x128xbf16>
    %25 = vector.shape_cast %24 : vector<1x16x128xbf16> to vector<16x128xbf16>
    %c4 = arith.constant 4 : index
    %c0_26 = arith.constant 0 : index
    %c0_27 = arith.constant 0 : index
    %26 = vector.load %arg2[%c4, %c0_26, %c0_27] : memref<16x16x16xbf16, #tpu.memory_space<vmem>>, vector<1x16x16xbf16>
    %27 = vector.shape_cast %26 : vector<1x16x16xbf16> to vector<16x16xbf16>
    %cst_28 = arith.constant dense<0.000000e+00> : vector<16x128xf32>
    %28 = tpu.matmul %27, %25, %cst_28 {dimension_numbers = #tpu.dot_dimension_numbers<[1], [0], [0], [1], [0, 0, 1, 1], [], []>} : vector<16x16xbf16>, vector<16x128xbf16>, vector<16x128xf32> -> vector<16x128xf32>
    %c0_29 = arith.constant 0 : index
    %c0_30 = arith.constant 0 : index
    %c2_31 = arith.constant 2 : index
    %29 = vector.load %arg1[%c0_29, %c0_30, %c2_31] : memref<1x16x256xbf16, #tpu.memory_space<vmem>>, vector<1x16x128xbf16>
    %30 = vector.shape_cast %29 : vector<1x16x128xbf16> to vector<16x128xbf16>
    %c5 = arith.constant 5 : index
    %c0_32 = arith.constant 0 : index
    %c0_33 = arith.constant 0 : index
    %31 = vector.load %arg2[%c5, %c0_32, %c0_33] : memref<16x16x16xbf16, #tpu.memory_space<vmem>>, vector<1x16x16xbf16>
    %32 = vector.shape_cast %31 : vector<1x16x16xbf16> to vector<16x16xbf16>
    %cst_34 = arith.constant dense<0.000000e+00> : vector<16x128xf32>
    %33 = tpu.matmul %32, %30, %cst_34 {dimension_numbers = #tpu.dot_dimension_numbers<[1], [0], [0], [1], [0, 0, 1, 1], [], []>} : vector<16x16xbf16>, vector<16x128xbf16>, vector<16x128xf32> -> vector<16x128xf32>
    %34 = arith.addf %28, %33 : vector<16x128xf32>
    %c0_35 = arith.constant 0 : index
    %c0_36 = arith.constant 0 : index
    %c11_37 = arith.constant 11 : index
    %35 = vector.load %arg1[%c0_35, %c0_36, %c11_37] : memref<1x16x256xbf16, #tpu.memory_space<vmem>>, vector<1x16x128xbf16>
    %36 = vector.shape_cast %35 : vector<1x16x128xbf16> to vector<16x128xbf16>
    %c6 = arith.constant 6 : index
    %c0_38 = arith.constant 0 : index
    %c0_39 = arith.constant 0 : index
    %37 = vector.load %arg2[%c6, %c0_38, %c0_39] : memref<16x16x16xbf16, #tpu.memory_space<vmem>>, vector<1x16x16xbf16>
    %38 = vector.shape_cast %37 : vector<1x16x16xbf16> to vector<16x16xbf16>
    %cst_40 = arith.constant dense<0.000000e+00> : vector<16x128xf32>
    %39 = tpu.matmul %38, %36, %cst_40 {dimension_numbers = #tpu.dot_dimension_numbers<[1], [0], [0], [1], [0, 0, 1, 1], [], []>} : vector<16x16xbf16>, vector<16x128xbf16>, vector<16x128xf32> -> vector<16x128xf32>
    %40 = arith.addf %34, %39 : vector<16x128xf32>
    %c0_41 = arith.constant 0 : index
    %c0_42 = arith.constant 0 : index
    %c12 = arith.constant 12 : index
    %41 = vector.load %arg1[%c0_41, %c0_42, %c12] : memref<1x16x256xbf16, #tpu.memory_space<vmem>>, vector<1x16x128xbf16>
    %42 = vector.shape_cast %41 : vector<1x16x128xbf16> to vector<16x128xbf16>
    %c7 = arith.constant 7 : index
    %c0_43 = arith.constant 0 : index
    %c0_44 = arith.constant 0 : index
    %43 = vector.load %arg2[%c7, %c0_43, %c0_44] : memref<16x16x16xbf16, #tpu.memory_space<vmem>>, vector<1x16x16xbf16>
    %44 = vector.shape_cast %43 : vector<1x16x16xbf16> to vector<16x16xbf16>
    %cst_45 = arith.constant dense<0.000000e+00> : vector<16x128xf32>
    %45 = tpu.matmul %44, %42, %cst_45 {dimension_numbers = #tpu.dot_dimension_numbers<[1], [0], [0], [1], [0, 0, 1, 1], [], []>} : vector<16x16xbf16>, vector<16x128xbf16>, vector<16x128xf32> -> vector<16x128xf32>
    %46 = arith.addf %40, %45 : vector<16x128xf32>
    %47 = arith.maximumf %23, %46 : vector<16x128xf32>
    %c0_46 = arith.constant 0 : index
    %c0_47 = arith.constant 0 : index
    %c10_48 = arith.constant 10 : index
    %48 = vector.load %arg1[%c0_46, %c0_47, %c10_48] : memref<1x16x256xbf16, #tpu.memory_space<vmem>>, vector<1x16x128xbf16>
    %49 = vector.shape_cast %48 : vector<1x16x128xbf16> to vector<16x128xbf16>
    %c8 = arith.constant 8 : index
    %c0_49 = arith.constant 0 : index
    %c0_50 = arith.constant 0 : index
    %50 = vector.load %arg2[%c8, %c0_49, %c0_50] : memref<16x16x16xbf16, #tpu.memory_space<vmem>>, vector<1x16x16xbf16>
    %51 = vector.shape_cast %50 : vector<1x16x16xbf16> to vector<16x16xbf16>
    %cst_51 = arith.constant dense<0.000000e+00> : vector<16x128xf32>
    %52 = tpu.matmul %51, %49, %cst_51 {dimension_numbers = #tpu.dot_dimension_numbers<[1], [0], [0], [1], [0, 0, 1, 1], [], []>} : vector<16x16xbf16>, vector<16x128xbf16>, vector<16x128xf32> -> vector<16x128xf32>
    %c0_52 = arith.constant 0 : index
    %c0_53 = arith.constant 0 : index
    %c11_54 = arith.constant 11 : index
    %53 = vector.load %arg1[%c0_52, %c0_53, %c11_54] : memref<1x16x256xbf16, #tpu.memory_space<vmem>>, vector<1x16x128xbf16>
    %54 = vector.shape_cast %53 : vector<1x16x128xbf16> to vector<16x128xbf16>
    %c9 = arith.constant 9 : index
    %c0_55 = arith.constant 0 : index
    %c0_56 = arith.constant 0 : index
    %55 = vector.load %arg2[%c9, %c0_55, %c0_56] : memref<16x16x16xbf16, #tpu.memory_space<vmem>>, vector<1x16x16xbf16>
    %56 = vector.shape_cast %55 : vector<1x16x16xbf16> to vector<16x16xbf16>
    %cst_57 = arith.constant dense<0.000000e+00> : vector<16x128xf32>
    %57 = tpu.matmul %56, %54, %cst_57 {dimension_numbers = #tpu.dot_dimension_numbers<[1], [0], [0], [1], [0, 0, 1, 1], [], []>} : vector<16x16xbf16>, vector<16x128xbf16>, vector<16x128xf32> -> vector<16x128xf32>
    %58 = arith.addf %52, %57 : vector<16x128xf32>
    %c0_58 = arith.constant 0 : index
    %c0_59 = arith.constant 0 : index
    %c20 = arith.constant 20 : index
    %59 = vector.load %arg1[%c0_58, %c0_59, %c20] : memref<1x16x256xbf16, #tpu.memory_space<vmem>>, vector<1x16x128xbf16>
    %60 = vector.shape_cast %59 : vector<1x16x128xbf16> to vector<16x128xbf16>
    %c10_60 = arith.constant 10 : index
    %c0_61 = arith.constant 0 : index
    %c0_62 = arith.constant 0 : index
    %61 = vector.load %arg2[%c10_60, %c0_61, %c0_62] : memref<16x16x16xbf16, #tpu.memory_space<vmem>>, vector<1x16x16xbf16>
    %62 = vector.shape_cast %61 : vector<1x16x16xbf16> to vector<16x16xbf16>
    %cst_63 = arith.constant dense<0.000000e+00> : vector<16x128xf32>
    %63 = tpu.matmul %62, %60, %cst_63 {dimension_numbers = #tpu.dot_dimension_numbers<[1], [0], [0], [1], [0, 0, 1, 1], [], []>} : vector<16x16xbf16>, vector<16x128xbf16>, vector<16x128xf32> -> vector<16x128xf32>
    %64 = arith.addf %58, %63 : vector<16x128xf32>
    %c0_64 = arith.constant 0 : index
    %c0_65 = arith.constant 0 : index
    %c21 = arith.constant 21 : index
    %65 = vector.load %arg1[%c0_64, %c0_65, %c21] : memref<1x16x256xbf16, #tpu.memory_space<vmem>>, vector<1x16x128xbf16>
    %66 = vector.shape_cast %65 : vector<1x16x128xbf16> to vector<16x128xbf16>
    %c11_66 = arith.constant 11 : index
    %c0_67 = arith.constant 0 : index
    %c0_68 = arith.constant 0 : index
    %67 = vector.load %arg2[%c11_66, %c0_67, %c0_68] : memref<16x16x16xbf16, #tpu.memory_space<vmem>>, vector<1x16x16xbf16>
    %68 = vector.shape_cast %67 : vector<1x16x16xbf16> to vector<16x16xbf16>
    %cst_69 = arith.constant dense<0.000000e+00> : vector<16x128xf32>
    %69 = tpu.matmul %68, %66, %cst_69 {dimension_numbers = #tpu.dot_dimension_numbers<[1], [0], [0], [1], [0, 0, 1, 1], [], []>} : vector<16x16xbf16>, vector<16x128xbf16>, vector<16x128xf32> -> vector<16x128xf32>
    %70 = arith.addf %64, %69 : vector<16x128xf32>
    %71 = arith.maximumf %47, %70 : vector<16x128xf32>
    %c0_70 = arith.constant 0 : index
    %c0_71 = arith.constant 0 : index
    %c11_72 = arith.constant 11 : index
    %72 = vector.load %arg1[%c0_70, %c0_71, %c11_72] : memref<1x16x256xbf16, #tpu.memory_space<vmem>>, vector<1x16x128xbf16>
    %73 = vector.shape_cast %72 : vector<1x16x128xbf16> to vector<16x128xbf16>
    %c12_73 = arith.constant 12 : index
    %c0_74 = arith.constant 0 : index
    %c0_75 = arith.constant 0 : index
    %74 = vector.load %arg2[%c12_73, %c0_74, %c0_75] : memref<16x16x16xbf16, #tpu.memory_space<vmem>>, vector<1x16x16xbf16>
    %75 = vector.shape_cast %74 : vector<1x16x16xbf16> to vector<16x16xbf16>
    %cst_76 = arith.constant dense<0.000000e+00> : vector<16x128xf32>
    %76 = tpu.matmul %75, %73, %cst_76 {dimension_numbers = #tpu.dot_dimension_numbers<[1], [0], [0], [1], [0, 0, 1, 1], [], []>} : vector<16x16xbf16>, vector<16x128xbf16>, vector<16x128xf32> -> vector<16x128xf32>
    %c0_77 = arith.constant 0 : index
    %c0_78 = arith.constant 0 : index
    %c12_79 = arith.constant 12 : index
    %77 = vector.load %arg1[%c0_77, %c0_78, %c12_79] : memref<1x16x256xbf16, #tpu.memory_space<vmem>>, vector<1x16x128xbf16>
    %78 = vector.shape_cast %77 : vector<1x16x128xbf16> to vector<16x128xbf16>
    %c13 = arith.constant 13 : index
    %c0_80 = arith.constant 0 : index
    %c0_81 = arith.constant 0 : index
    %79 = vector.load %arg2[%c13, %c0_80, %c0_81] : memref<16x16x16xbf16, #tpu.memory_space<vmem>>, vector<1x16x16xbf16>
    %80 = vector.shape_cast %79 : vector<1x16x16xbf16> to vector<16x16xbf16>
    %cst_82 = arith.constant dense<0.000000e+00> : vector<16x128xf32>
    %81 = tpu.matmul %80, %78, %cst_82 {dimension_numbers = #tpu.dot_dimension_numbers<[1], [0], [0], [1], [0, 0, 1, 1], [], []>} : vector<16x16xbf16>, vector<16x128xbf16>, vector<16x128xf32> -> vector<16x128xf32>
    %82 = arith.addf %76, %81 : vector<16x128xf32>
    %c0_83 = arith.constant 0 : index
    %c0_84 = arith.constant 0 : index
    %c21_85 = arith.constant 21 : index
    %83 = vector.load %arg1[%c0_83, %c0_84, %c21_85] : memref<1x16x256xbf16, #tpu.memory_space<vmem>>, vector<1x16x128xbf16>
    %84 = vector.shape_cast %83 : vector<1x16x128xbf16> to vector<16x128xbf16>
    %c14 = arith.constant 14 : index
    %c0_86 = arith.constant 0 : index
    %c0_87 = arith.constant 0 : index
    %85 = vector.load %arg2[%c14, %c0_86, %c0_87] : memref<16x16x16xbf16, #tpu.memory_space<vmem>>, vector<1x16x16xbf16>
    %86 = vector.shape_cast %85 : vector<1x16x16xbf16> to vector<16x16xbf16>
    %cst_88 = arith.constant dense<0.000000e+00> : vector<16x128xf32>
    %87 = tpu.matmul %86, %84, %cst_88 {dimension_numbers = #tpu.dot_dimension_numbers<[1], [0], [0], [1], [0, 0, 1, 1], [], []>} : vector<16x16xbf16>, vector<16x128xbf16>, vector<16x128xf32> -> vector<16x128xf32>
    %88 = arith.addf %82, %87 : vector<16x128xf32>
    %c0_89 = arith.constant 0 : index
    %c0_90 = arith.constant 0 : index
    %c22 = arith.constant 22 : index
    %89 = vector.load %arg1[%c0_89, %c0_90, %c22] : memref<1x16x256xbf16, #tpu.memory_space<vmem>>, vector<1x16x128xbf16>
    %90 = vector.shape_cast %89 : vector<1x16x128xbf16> to vector<16x128xbf16>
    %c15 = arith.constant 15 : index
    %c0_91 = arith.constant 0 : index
    %c0_92 = arith.constant 0 : index
    %91 = vector.load %arg2[%c15, %c0_91, %c0_92] : memref<16x16x16xbf16, #tpu.memory_space<vmem>>, vector<1x16x16xbf16>
    %92 = vector.shape_cast %91 : vector<1x16x16xbf16> to vector<16x16xbf16>
    %cst_93 = arith.constant dense<0.000000e+00> : vector<16x128xf32>
    %93 = tpu.matmul %92, %90, %cst_93 {dimension_numbers = #tpu.dot_dimension_numbers<[1], [0], [0], [1], [0, 0, 1, 1], [], []>} : vector<16x16xbf16>, vector<16x128xbf16>, vector<16x128xf32> -> vector<16x128xf32>
    %94 = arith.addf %88, %93 : vector<16x128xf32>
    %95 = arith.maximumf %71, %94 : vector<16x128xf32>
    %96 = vector.broadcast %0 : vector<16x1xf32> to vector<16x128xf32>
    %97 = arith.addf %95, %96 : vector<16x128xf32>
    %cst_94 = arith.constant 0.000000e+00 : f32
    %98 = vector.broadcast %cst_94 : f32 to vector<16x128xf32>
    %99 = arith.maximumf %97, %98 : vector<16x128xf32>
    %100 = arith.truncf %99 : vector<16x128xf32> to vector<16x128xbf16>
    %c0_95 = arith.constant 0 : index
    %c0_96 = arith.constant 0 : index
    %c0_97 = arith.constant 0 : index
    %101 = vector.load %arg4[%c0_95, %c0_96, %c0_97] : memref<1x16x128xbf16, #tpu.memory_space<vmem>>, vector<1x16x128xbf16>
    %102 = vector.shape_cast %101 : vector<1x16x128xbf16> to vector<16x128xbf16>
    %103 = vector.shape_cast %100 : vector<16x128xbf16> to vector<1x16x128xbf16>
    tpu.vector_store %arg4[%c0_95, %c0_96, %c0_97], %103 {strides = array<i32>} : memref<1x16x128xbf16, #tpu.memory_space<vmem>>, vector<1x16x128xbf16>,
    return
  }
  func.func @transform_0(%arg0: i32) -> (i32, i32, i32) {
    %c0_i32 = arith.constant 0 : i32
    %c0_i32_0 = arith.constant 0 : i32
    %c0_i32_1 = arith.constant 0 : i32
    return %arg0, %c0_i32, %c0_i32_0 : i32, i32, i32
  }
  func.func @transform_1(%arg0: i32) -> (i32, i32, i32) {
    %c0_i32 = arith.constant 0 : i32
    %c0_i32_0 = arith.constant 0 : i32
    %c0_i32_1 = arith.constant 0 : i32
    %c0_i32_2 = arith.constant 0 : i32
    return %c0_i32, %c0_i32_0, %c0_i32_1 : i32, i32, i32
  }
  func.func @transform_2(%arg0: i32) -> (i32, i32) {
    %c0_i32 = arith.constant 0 : i32
    %c0_i32_0 = arith.constant 0 : i32
    %c0_i32_1 = arith.constant 0 : i32
    return %c0_i32, %c0_i32_0 : i32, i32
  }
  func.func @transform_3(%arg0: i32) -> (i32, i32, i32) {
    %c0_i32 = arith.constant 0 : i32
    %c0_i32_0 = arith.constant 0 : i32
    %c0_i32_1 = arith.constant 0 : i32
    return %arg0, %c0_i32, %c0_i32_0 : i32, i32, i32
  }
}

</mosaic_0001>

<bundles_post_ra>
// kernel: tpu_custom_call.1
= control target key start
LH: loop header
LB: loop body
LE: loop exit
PB: predicated region body
PF: predicated region fallthrough
CT: control target
= control target key end

     0   :  { %8 = vsyncpa [#allocation3], 0  ;;  %s1450_s0 = inlined_call_operand.vmem [shape: bf16[1,16,256], index: 0, kind: input, shape index: {}]   ;;  %s1451_s1 = inlined_call_operand.hbm [shape: bf16[16,16,16], index: 1, kind: input, shape index: {}]   ;;  %s1452_s2 = inlined_call_operand.vmem [shape: f32[16,1], index: 2, kind: input, shape index: {}]   ;;  %s1453_s3 = inlined_call_operand.hbm [shape: bf16[1,16,128], index: 3, kind: output, shape index: {}]  }
   0x1   :  { %9 = vsyncpa [#allocation4], 0  ;;  %s1306_s12 = smov [#allocation2]   ;;  %s1258_s16 = scalar_lea.hbm %s1451_s1, 2048 }
   0x2   :  { %s17_s13 = sshll.u32 %s1306_s12, 4  ;;  %p1259_p0 = scmp.ne.s32.totalorder %s1451_s1, %s1258_s16  ;;  %s18_s13 = int_to_ptr.vmem [resolvable:$true] %s17_s13 }
   0x3   :  { %p1262_p1 = scmp.lt.u32.totalorder %s1258_s16, %s1451_s1 }
   0x5   :  { %p1264_p2 = pnand %p1262_p1, %p1259_p0 }
   0x7   :  { %1267 = shalt.err (!%p1264_p2)
}
   0x8   :  { %s1268_s21 = scalar_lea.vmem %s18_s13, 2048  ;;  %p1273_p4 = scmp.lt.s32.totalorder %s18_s13, %s18_s13 }
   0x9   :  { %p1269_p3 = scmp.ne.s32.totalorder %s18_s13, %s1268_s21  ;;  %p1274_p5 = scmp.lt.s32.totalorder %s1268_s21, %s1268_s21 }
   0xb   :  { %p1275_p6 = por %p1274_p5, %p1273_p4 }
   0xd   :  { %p1276_p7 = pnand %p1275_p6, %p1269_p3 }
   0xf   :  { %1279 = shalt.err (!%p1276_p7)
}
  0x10   :  { %s1307_s22 = smov 64   ;;  %s1308_s23 = smov 4  }
  0x11   :  { %23 = dma.hbm_to_vmem [thread:$0]  %s1451_s1, 2048, %s18_s13, [#allocation3], %s1307_s22, %s1307_s22, %s1308_s23  }
  0x12   :  { %1302 = dma.done.wait [#allocation3], 2048  }
  0x13   :  { %1303 = vsyncadd [#allocation3], 4294965248  ;;  %v1309_v0 = vmov 0.0   ;;  %vm1310_vm0 = vmmov 0   ;;  %v1238_v1 = vld [vmem:[%s1450_s0] ss:$8 sps:$4 sm:$0xff]  }
  0x14   :  { %1077 = vmatprep.subr.bf16.mxu0 %v1309_v0  ;;  %1101 = vmatprep.subr.bf16.mxu1 %v1309_v0  ;;  %s1311_s28 = smov 126   ;;  %s1312_s1 = smov 127   ;;  %v1240_v2 = vld [vmem:[%s1450_s0 + $0x4] ss:$8 sps:$4 sm:$0xff]   ;;  %v1319_v5 = vmov 0   ;;  %vm58_vm1 = vcmask 1039360  }
  0x15   :  { %1079 = vmatprep.mubr.msk.bf16.mxu0 %vm1310_vm0, %v1309_v0  ;;  %1103 = vmatprep.mubr.msk.bf16.mxu1 %vm1310_vm0, %v1309_v0  ;;  %s1313_s4 = smov 118   ;;  %s1314_s5 = smov 117   ;;  %v30_v3 = vld [vmem:[%s1452_s2] sm:$0xff]  ;;  %v31_v4 = vld [vmem:[%s1452_s2 + $0x8] sm:$0xff]  ;;  %vm298_vm2 = vcmask 1031168   ;;  %vm61_vm3 = vcmask 130048  }
  0x16   :  { %294 = vrot.lane.b32.xlu1 %v1238_v1, %s1311_s28  ;;  %54 = vrot.lane.b32.xlu0 %v1238_v1, %s1312_s1  ;;  %s1315_s6 = smov 116   ;;  %s1316_s7 = smov 108   ;;  %v1241_v12 = vld [vmem:[#allocation2 + $0x8] sm:$0xff]   ;;  %vm173_vm4 = vcmask 965632   ;;  %vm234_vm5 = vcmask 957440   ;;  %v1244_v19 = vld [vmem:[#allocation2] sm:$0xff]  }
  0x17   :  { %s1317_s8 = smov 107   ;;  %s1318_s9 = smov 106   ;;  %1236 = vset.pattern.permute.xlu0 %v1319_v5  ;;  %1237 = vset.pattern.permute.xlu1 %v1319_v5  ;;  %v1242_v13 = vld [vmem:[#allocation2 + $0x28] sm:$0xff]   ;;  %v1245_v20 = vld [vmem:[#allocation2 + $0x20] sm:$0xff]   ;;  %vm460_vm6 = vcmask 949248   ;;  %v1246_v25 = vld [vmem:[#allocation2 + $0x10] sm:$0xff]  }
  0x18   :  { %v1243_v14 = vld [vmem:[%s1450_s0] ss:$8 sps:$4 sm:$0xff]   ;;  %v1247_v26 = vld [vmem:[#allocation2 + $0x30] sm:$0xff]   ;;  %v1248_v28 = vld [vmem:[#allocation2 + $0x18] sm:$0xff]   ;;  %vm627_vm7 = vcmask 883712   ;;  %vm688_vm8 = vcmask 875520  }
  0x19   :  { %v1249_v29 = vld [vmem:[#allocation2 + $0x38] sm:$0xff]   ;;  %v1250_v30 = vld [vmem:[#allocation2 + $0x48] sm:$0xff]   ;;  %v1252_v36 = vld [vmem:[#allocation2 + $0x40] sm:$0xff]   ;;  %vm909_vm9 = vcmask 867328   ;;  %s1320_s0 = smov [#allocation5]  }
  0x1a   :  { %296 = vrot.lane.b32.xlu1 %v1240_v2, %s1311_s28  ;;  %56 = vrot.lane.b32.xlu0 %v1240_v2, %s1312_s1  ;;  %v1251_v31 = vld [vmem:[#allocation2 + $0x68] sm:$0xff]   ;;  %v1253_v37 = vld [vmem:[#allocation2 + $0x60] sm:$0xff]   ;;  %v1254_v42 = vld [vmem:[#allocation2 + $0x50] sm:$0xff]   ;;  %s989_s15 = sshll.u32 %s1320_s0, 4  ;;  %s990_s15 = int_to_ptr.vmem [resolvable:$true] %s989_s15 }
  0x1b   :  { %v1255_v43 = vld [vmem:[#allocation2 + $0x70] sm:$0xff]   ;;  %v1256_v45 = vld [vmem:[#allocation2 + $0x58] sm:$0xff]   ;;  %s1280_s16 = scalar_lea.vmem %s990_s15, 128  ;;  %p1285_p9 = scmp.lt.s32.totalorder %s990_s15, %s990_s15 }
  0x1c   :  { %v1257_v46 = vld [vmem:[#allocation2 + $0x78] sm:$0xff]   ;;  %p1281_p8 = scmp.ne.s32.totalorder %s990_s15, %s1280_s16  ;;  %p1286_p10 = scmp.lt.s32.totalorder %s1280_s16, %s1280_s16 }
  0x1e   :  { %171 = vrot.lane.b32.xlu1 %v1240_v2, %s1313_s4  ;;  %169 = vrot.lane.b32.xlu0 %v1238_v1, %s1313_s4  ;;  %p1287_p11 = por %p1286_p10, %p1285_p9 }
  0x20   :  { %p1288_p12 = pnand %p1287_p11, %p1281_p8 }
  0x22   :  { %232 = vrot.lane.b32.xlu1 %v1240_v2, %s1314_s5  ;;  %230 = vrot.lane.b32.xlu0 %v1238_v1, %s1314_s5 }
  0x26   :  { %458 = vrot.lane.b32.xlu1 %v1240_v2, %s1315_s6  ;;  %456 = vrot.lane.b32.xlu0 %v1238_v1, %s1315_s6 }
  0x2a   :  { %625 = vrot.lane.b32.xlu1 %v1240_v2, %s1316_s7  ;;  %623 = vrot.lane.b32.xlu0 %v1238_v1, %s1316_s7 }
  0x2e   :  { %686 = vrot.lane.b32.xlu1 %v1240_v2, %s1317_s8  ;;  %684 = vrot.lane.b32.xlu0 %v1238_v1, %s1317_s8 }
  0x32   :  { %907 = vrot.lane.b32.xlu1 %v1240_v2, %s1318_s9  ;;  %905 = vrot.lane.b32.xlu0 %v1238_v1, %s1318_s9 }
  0x36   :  { %962 = vperm.xlu0 %1236, %v30_v3   ;;  %967 = vperm.xlu1 %1237, %v31_v4  }
  0x88   :  { %v295_v6 = vpop.permute.xlu1 %294  ;;  %v55_v7 = vpop.permute.xlu0 %54 }
  0x8c   :  { %v297_v8 = vpop.permute.xlu1 %296  ;;  %v57_v9 = vpop.permute.xlu0 %56 }
  0x8d   :  { %v59_v10 = vsel %vm58_vm1, %v55_v7, %v57_v9  ;;  %v299_v11 = vsel %vm298_vm2, %v295_v6, %v297_v8 }
  0x8e   :  { %1078 = vmatpush3.bf16.msra.mxu0 %v59_v10  ;;  %1102 = vmatpush3.bf16.msra.mxu1 %v299_v11 }
  0x8f   :  { %1083 = vmatprep.subr.bf16.mxu0 %v1309_v0  ;;  %1107 = vmatprep.subr.bf16.mxu1 %v1309_v0 }
  0x90   :  { %v172_v15 = vpop.permute.xlu1 %171  ;;  %v170_v16 = vpop.permute.xlu0 %169 }
  0x91   :  { %1080 = vmatmul.mubr.msk.bf16.vlgmr.msra.gmra.mrb[0].mxu0 %vm61_vm3, %v1241_v12  ;;  %1104 = vmatmul.mubr.msk.bf16.vlgmr.msra.gmra.mrb[0].mxu1 %vm61_vm3, %v1242_v13  ;;  %v174_v21 = vsel %vm173_vm4, %v170_v16, %v172_v15 }
  0x92   :  { %1084 = vmatpush3.bf16.msra.mxu0 %v1243_v14  ;;  %1108 = vmatpush3.bf16.msra.mxu1 %v59_v10 }
  0x93   :  { %1085 = vmatprep.mubr.msk.bf16.mxu0 %vm1310_vm0, %v1309_v0  ;;  %1089 = vmatprep.subr.bf16.mxu0 %v1309_v0 }
  0x94   :  { %1109 = vmatprep.mubr.msk.bf16.mxu1 %vm1310_vm0, %v1309_v0  ;;  %1113 = vmatprep.subr.bf16.mxu1 %v1309_v0  ;;  %v233_v17 = vpop.permute.xlu1 %232  ;;  %v231_v18 = vpop.permute.xlu0 %230 }
  0x95   :  { %v235_v22 = vsel %vm234_vm5, %v231_v18, %v233_v17 }
  0x98   :  { %v459_v23 = vpop.permute.xlu1 %458  ;;  %v457_v24 = vpop.permute.xlu0 %456 }
  0x99   :  { %v461_v27 = vsel %vm460_vm6, %v457_v24, %v459_v23 }
  0x9c   :  { %v626_v32 = vpop.permute.xlu1 %625  ;;  %v624_v33 = vpop.permute.xlu0 %623 }
  0x9d   :  { %1086 = vmatmul.mubr.msk.bf16.vlgmr.msra.gmra.mrb[0].mxu0 %vm61_vm3, %v1244_v19  ;;  %1110 = vmatmul.mubr.msk.bf16.vlgmr.msra.gmra.mrb[0].mxu1 %vm61_vm3, %v1245_v20  ;;  %v628_v38 = vsel %vm627_vm7, %v624_v33, %v626_v32 }
  0x9e   :  { %1090 = vmatpush3.bf16.msra.mxu0 %v174_v21  ;;  %1114 = vmatpush3.bf16.msra.mxu1 %v235_v22 }
  0x9f   :  { %1091 = vmatprep.mubr.msk.bf16.mxu0 %vm1310_vm0, %v1309_v0  ;;  %1095 = vmatprep.subr.bf16.mxu0 %v1309_v0 }
  0xa0   :  { %1115 = vmatprep.mubr.msk.bf16.mxu1 %vm1310_vm0, %v1309_v0  ;;  %1119 = vmatprep.subr.bf16.mxu1 %v1309_v0  ;;  %v687_v34 = vpop.permute.xlu1 %686  ;;  %v685_v35 = vpop.permute.xlu0 %684 }
  0xa1   :  { %v689_v39 = vsel %vm688_vm8, %v685_v35, %v687_v34 }
  0xa4   :  { %v908_v40 = vpop.permute.xlu1 %907  ;;  %v906_v41 = vpop.permute.xlu0 %905 }
  0xa5   :  { %v910_v44 = vsel %vm909_vm9, %v906_v41, %v908_v40 }
  0xa9   :  { %1092 = vmatmul.mubr.msk.bf16.vlgmr.msra.gmra.mrb[0].mxu0 %vm61_vm3, %v1246_v25  ;;  %1116 = vmatmul.mubr.msk.bf16.vlgmr.msra.gmra.mrb[0].mxu1 %vm61_vm3, %v1247_v26 }
  0xaa   :  { %1096 = vmatpush3.bf16.msra.mxu0 %v235_v22  ;;  %1120 = vmatpush3.bf16.msra.mxu1 %v461_v27 }
  0xab   :  { %1097 = vmatprep.mubr.msk.bf16.mxu0 %vm1310_vm0, %v1309_v0  ;;  %1121 = vmatprep.mubr.msk.bf16.mxu1 %vm1310_vm0, %v1309_v0 }
  0xac   :  { %1125 = vmatprep.subr.bf16.mxu0 %v1309_v0  ;;  %1149 = vmatprep.subr.bf16.mxu1 %v1309_v0 }
  0xb5   :  { %1098 = vmatmul.mubr.msk.bf16.vlgmr.msra.gmra.mrb[0].mxu0 %vm61_vm3, %v1248_v28  ;;  %1122 = vmatmul.mubr.msk.bf16.vlgmr.msra.gmra.mrb[0].mxu1 %vm61_vm3, %v1249_v29  ;;  %v963_v57 = vpop.permute.xlu0 %962  ;;  %v968_v5 = vpop.permute.xlu1 %967 }
  0xb6   :  { %1126 = vmatpush3.bf16.msra.mxu0 %v235_v22  ;;  %1150 = vmatpush3.bf16.msra.mxu1 %v461_v27 }
  0xb7   :  { %1127 = vmatprep.mubr.msk.bf16.mxu0 %vm1310_vm0, %v1309_v0  ;;  %1131 = vmatprep.subr.bf16.mxu0 %v1309_v0 }
  0xb8   :  { %1151 = vmatprep.mubr.msk.bf16.mxu1 %vm1310_vm0, %v1309_v0  ;;  %1155 = vmatprep.subr.bf16.mxu1 %v1309_v0 }
  0xbd   :  { %1128 = vmatmul.mubr.msk.bf16.vlgmr.msra.gmra.mrb[4].mxu0 %vm61_vm3, %v1250_v30  ;;  %1152 = vmatmul.mubr.msk.bf16.vlgmr.msra.gmra.mrb[4].mxu1 %vm61_vm3, %v1251_v31 }
  0xbe   :  { %1132 = vmatpush3.bf16.msra.mxu0 %v174_v21  ;;  %1156 = vmatpush3.bf16.msra.mxu1 %v235_v22 }
  0xbf   :  { %1133 = vmatprep.mubr.msk.bf16.mxu0 %vm1310_vm0, %v1309_v0  ;;  %1137 = vmatprep.subr.bf16.mxu0 %v1309_v0 }
  0xc0   :  { %1157 = vmatprep.mubr.msk.bf16.mxu1 %vm1310_vm0, %v1309_v0  ;;  %1161 = vmatprep.subr.bf16.mxu1 %v1309_v0 }
  0xc9   :  { %1134 = vmatmul.mubr.msk.bf16.vlgmr.msra.gmra.mrb[4].mxu0 %vm61_vm3, %v1252_v36  ;;  %1158 = vmatmul.mubr.msk.bf16.vlgmr.msra.gmra.mrb[4].mxu1 %vm61_vm3, %v1253_v37 }
  0xca   :  { %1138 = vmatpush3.bf16.msra.mxu0 %v628_v38  ;;  %1162 = vmatpush3.bf16.msra.mxu1 %v689_v39 }
  0xcb   :  { %1139 = vmatprep.mubr.msk.bf16.mxu0 %vm1310_vm0, %v1309_v0  ;;  %1143 = vmatprep.subr.bf16.mxu0 %v1309_v0 }
  0xcc   :  { %1163 = vmatprep.mubr.msk.bf16.mxu1 %vm1310_vm0, %v1309_v0  ;;  %1167 = vmatprep.subr.bf16.mxu1 %v1309_v0 }
  0xd5   :  { %1140 = vmatmul.mubr.msk.bf16.vlgmr.msra.gmra.mrb[4].mxu0 %vm61_vm3, %v1254_v42  ;;  %1164 = vmatmul.mubr.msk.bf16.vlgmr.msra.gmra.mrb[4].mxu1 %vm61_vm3, %v1255_v43 }
  0xd6   :  { %1144 = vmatpush3.bf16.msra.mxu0 %v689_v39  ;;  %1168 = vmatpush3.bf16.msra.mxu1 %v910_v44 }
  0xd7   :  { %1145 = vmatprep.mubr.msk.bf16.mxu0 %vm1310_vm0, %v1309_v0  ;;  %1169 = vmatprep.mubr.msk.bf16.mxu1 %vm1310_vm0, %v1309_v0 }
  0xe1   :  { %1146 = vmatmul.mubr.msk.bf16.vlgmr.msra.gmra.mrb[4].mxu0 %vm61_vm3, %v1256_v45  ;;  %1170 = vmatmul.mubr.msk.bf16.vlgmr.msra.gmra.mrb[4].mxu1 %vm61_vm3, %v1257_v46 }
 0x188   :  { %v274_v47 = vpop.f32.mrb[0].mxu0  ;;  %v500_v48 = vpop.f32.mrb[0].mxu1 }
 0x189   :  { %v509_v49 = vmax.f32 %v274_v47, %v500_v48  ;;  %v1099_v50 = vpop.f32.mrb[1].mxu0  ;;  %v1123_v51 = vpop.f32.mrb[1].mxu1 }
 0x18a   :  { %v277_v52 = vpop.f32.mrb[2].mxu0  ;;  %v503_v53 = vpop.f32.mrb[2].mxu1 }
 0x18b   :  { %v510_v54 = vmax.f32 %v277_v52, %v503_v53  ;;  %v1100_v55 = vpop.f32.mrb[3].mxu0  ;;  %v1124_v56 = vpop.f32.mrb[3].mxu1 }
 0x1b4   :  { %v728_v58 = vpop.f32.mrb[4].mxu0  ;;  %v949_v59 = vpop.f32.mrb[4].mxu1 }
 0x1b5   :  { %v737_v60 = vmax.f32 %v509_v49, %v728_v58  ;;  %v1147_v61 = vpop.f32.mrb[5].mxu0  ;;  %v1171_v62 = vpop.f32.mrb[5].mxu1 }
 0x1b6   :  { %v731_v63 = vpop.f32.mrb[6].mxu0  ;;  %v952_v0 = vpop.f32.mrb[6].mxu1 }
 0x1b7   :  { %v958_v1 = vmax.f32 %v737_v60, %v949_v59  ;;  %v738_v2 = vmax.f32 %v510_v54, %v731_v63  ;;  %v1148_v3 = vpop.f32.mrb[7].mxu0  ;;  %v1172_v4 = vpop.f32.mrb[7].mxu1 }
 0x1b9   :  { %v959_v6 = vmax.f32 %v738_v2, %v952_v0  ;;  %v970_v7 = vadd.f32 %v963_v57, %v958_v1 }
 0x1bb   :  { %v971_v8 = vadd.f32 %v968_v5, %v959_v6  ;;  %v972_v9 = vmax.f32 %v970_v7, 0.0 }
 0x1bd   :  { %v973_v10 = vmax.f32 %v971_v8, 0.0 }
 0x1bf   :  { %v1043_v11 = vpack.c.bf16 %v973_v10, %v972_v9 }
 0x1c1   :  { %1044 = vst [vmem:[#allocation5] sm:$0xff] %v1043_v11  }
 0x1c2   :  { %1291 = shalt.err (!%p1288_p12)
}
 0x1c3   :  { %s1292_s19 = scalar_lea.hbm %s1453_s3, 128 }
 0x1c4   :  { %p1293_p13 = scmp.ne.s32.totalorder %s1453_s3, %s1292_s19  ;;  %p1296_p0 = scmp.lt.u32.totalorder %s1292_s19, %s1453_s3 }
 0x1c6   :  { %p1298_p1 = pnand %p1296_p0, %p1293_p13 }
 0x1c8   :  { %1301 = shalt.err (!%p1298_p1)
}
 0x1c9   :  { %995 = dma.vmem_to_hbm [thread:$0]  %s990_s15, 128, %s1453_s3, [#allocation4], %s1307_s22, %s1307_s22, %s1308_s23  }
 0x1ca   :  { %1304 = dma.done.wait [#allocation4], 128  }
 0x1cb   :  { %1305 = vsyncadd [#allocation4], 4294967168 }
 0x1cc   :  { %999 = vsyncpa [#allocation3], 1 }
 0x1cd   :  { %1000 = vsyncpa [#allocation4], 1 }

</bundles_post_ra>
